<compile_context>
chip_gen: v7x
topology: tpu7x:2x2x1
jax: 0.10.0
libtpu: 0.0.40
codegen_flags: <defaults>
</compile_context>

<pallas_src>
import jax
import jax.numpy as jnp
from jax.experimental import pallas as pl
from jax.experimental.pallas import tpu as pltpu


def householder_kernel(v_ref, s_ref, h_ref, s_new_ref):
    v = v_ref[...]                                      # (TB, K)
    s = s_ref[...]                                      # (TB, K)
    TB, K = v.shape

    # Per-batch scale  -2 / ||v||^2  (one reciprocal per row, exact).
    norm_sq = jnp.sum(v * v, axis=1, keepdims=True)     # (TB, 1)
    scale = -2.0 * pl.reciprocal(norm_sq, approx=False)  # (TB, 1)

    # s_new = s + scale * (v . s) * v      (== H @ s, rank-1 update)
    v_dot_s = jnp.sum(v * s, axis=1, keepdims=True)     # (TB, 1)
    s_new_ref[...] = s + (scale * v_dot_s) * v

    # Row-major flattened Householder matrix:
    #   H_flat[b, j*K + l] = eye[j, l] + scale[b] * v[b, j] * v[b, l]
    # Built as K lane-broadcast multiplies concatenated along the lane dim —
    # stays lane-dense (last dim K*K) and avoids any 3-D relayout/reshape
    # inside the kernel.  (For very large K, switch to a blocked construction
    # to bound trace-time unrolling.)
    sv = scale * v                                      # (TB, K)
    rows = [sv[:, j:j + 1] * v for j in range(K)]       # K x (TB, K)
    h_flat = jnp.concatenate(rows, axis=1)              # (TB, K*K)

    # Diagonal of the row-major flatten = every (K+1)-th element.
    idx = jax.lax.broadcasted_iota(jnp.int32, (1, K * K), 1)
    eye_flat = (idx % (K + 1) == 0).astype(h_flat.dtype)

    h_ref[...] = h_flat + eye_flat


def _choose_batch_tile(B, K, dtype_bytes=4, vmem_budget_bytes=16 * 1024 * 1024):
    """Largest batch tile that divides B and keeps the double-buffered working
    set (H tile dominates) well inside VMEM.  The budget is conservative so the
    same tile also fits v7x's 64 MiB VMEM."""
    per_row = 2 * (K * K + 3 * K) * dtype_bytes         # double-buffered rows
    cap = max(1, vmem_budget_bytes // per_row)
    if B <= cap:
        return B
    start = min(cap, B)
    start -= start % 8                                  # keep sublane alignment
    for tb in range(start, 7, -8):
        if B % tb == 0:
            return tb
    return B                                            # fallback: whole batch


def hf_forward(i, v, s, H):
    """Matches HF.forward(i, v, s, H): stores H[str(i)] and returns s_new."""
    B, K = v.shape
    s = s.reshape(B, -1)                                # no-op for (B, K) input

    tb = _choose_batch_tile(B, K)
    grid = (B // tb,)

    h_flat, s_new = pl.pallas_call(
        householder_kernel,
        grid=grid,
        out_shape=(
            jax.ShapeDtypeStruct((B, K * K), jnp.float32),
            jax.ShapeDtypeStruct((B, K), jnp.float32),
        ),
        in_specs=[
            pl.BlockSpec((tb, K), lambda b: (b, 0)),
            pl.BlockSpec((tb, K), lambda b: (b, 0)),
        ],
        out_specs=(
            pl.BlockSpec((tb, K * K), lambda b: (b, 0)),
            pl.BlockSpec((tb, K), lambda b: (b, 0)),
        ),
        compiler_params=pltpu.CompilerParams(
            dimension_semantics=("parallel",),
        ),
    )(v, s)

    # Free (row-major contiguous) reshape back to the (B, K, K) layout the
    # reference module stores.
    H[str(i)] = h_flat.reshape(B, K, K)
    return s_new


def _reference(v, s):
    vvT = v[:, :, None] * v[:, None, :]
    norm_sq = jnp.sum(v * v, axis=1)[:, None, None]
    K = v.shape[1]
    h = jnp.eye(K, dtype=v.dtype)[None] - 2.0 * vvT / norm_sq
    s_new = jnp.einsum("bkj,bj->bk", h, s)
    return h, s_new


if __name__ == "__main__":
    B, K = 2, 8  # batch_size x latent_size
    key = jax.random.PRNGKey(0)
    k1, k2 = jax.random.split(key)
    v = jax.random.normal(k1, (B, K), dtype=jnp.float32)
    s = jax.random.normal(k2, (B, K), dtype=jnp.float32)

    H = {}
    s_new = hf_forward(0, v, s, H)
    jax.block_until_ready(s_new)
    jax.block_until_ready(H["0"])

    # Silent correctness check against a pure-JAX reference.
    h_ref, s_ref_out = _reference(v, s)
    assert jnp.allclose(H["0"], h_ref, atol=1e-5, rtol=1e-5)
    assert jnp.allclose(s_new, s_ref_out, atol=1e-5, rtol=1e-5)

    print("KERNEL_OK")
</pallas_src>

<mosaic_0001>
module attributes {stable_mosaic.version = 11 : i64} {
  func.func @householder_kernel(%arg0: i32, %arg1: memref<2x8xf32, #tpu.memory_space<vmem>>, %arg2: memref<2x8xf32, #tpu.memory_space<vmem>>, %arg3: memref<2x64xf32, #tpu.memory_space<vmem>>, %arg4: memref<2x8xf32, #tpu.memory_space<vmem>>) attributes {dimension_semantics = [#tpu.dimension_semantics<parallel>], iteration_bounds = array<i64: 1>, scalar_prefetch = 0 : i64, scratch_operands = 0 : i64, tpu.core_type = #tpu.core_type<tc>, window_params = [{transform_indices = @transform_0, window_bounds = array<i64: 2, 8>}, {transform_indices = @transform_1, window_bounds = array<i64: 2, 8>}, {transform_indices = @transform_2, window_bounds = array<i64: 2, 64>}, {transform_indices = @transform_3, window_bounds = array<i64: 2, 8>}]} {
    %c0 = arith.constant 0 : index
    %c0_0 = arith.constant 0 : index
    %0 = vector.load %arg1[%c0, %c0_0] : memref<2x8xf32, #tpu.memory_space<vmem>>, vector<2x8xf32>
    %c0_1 = arith.constant 0 : index
    %c0_2 = arith.constant 0 : index
    %1 = vector.load %arg2[%c0_1, %c0_2] : memref<2x8xf32, #tpu.memory_space<vmem>>, vector<2x8xf32>
    %2 = arith.mulf %0, %0 : vector<2x8xf32>
    %cst = arith.constant dense<0.000000e+00> : vector<2xf32>
    %3 = vector.multi_reduction <add>, %2, %cst [1] : vector<2x8xf32> to vector<2xf32>
    %4 = vector.shape_cast %3 : vector<2xf32> to vector<2x1xf32>
    %5 = tpu.reciprocal %4 : vector<2x1xf32> -> vector<2x1xf32>
    %cst_3 = arith.constant -2.000000e+00 : f32
    %6 = vector.broadcast %cst_3 : f32 to vector<2x1xf32>
    %7 = arith.mulf %6, %5 : vector<2x1xf32>
    %8 = arith.mulf %0, %1 : vector<2x8xf32>
    %cst_4 = arith.constant dense<0.000000e+00> : vector<2xf32>
    %9 = vector.multi_reduction <add>, %8, %cst_4 [1] : vector<2x8xf32> to vector<2xf32>
    %10 = vector.shape_cast %9 : vector<2xf32> to vector<2x1xf32>
    %11 = arith.mulf %7, %10 : vector<2x1xf32>
    %12 = vector.broadcast %11 : vector<2x1xf32> to vector<2x8xf32>
    %13 = arith.mulf %12, %0 : vector<2x8xf32>
    %14 = arith.addf %1, %13 : vector<2x8xf32>
    %c0_5 = arith.constant 0 : index
    %c0_6 = arith.constant 0 : index
    %15 = vector.load %arg4[%c0_5, %c0_6] : memref<2x8xf32, #tpu.memory_space<vmem>>, vector<2x8xf32>
    tpu.vector_store %arg4[%c0_5, %c0_6], %14 {strides = array<i32>} : memref<2x8xf32, #tpu.memory_space<vmem>>, vector<2x8xf32>,
    %16 = vector.broadcast %7 : vector<2x1xf32> to vector<2x8xf32>
    %17 = arith.mulf %16, %0 : vector<2x8xf32>
    %18 = vector.extract_strided_slice %17 {offsets = [0, 0], sizes = [2, 1], strides = [1, 1]} : vector<2x8xf32> to vector<2x1xf32>
    %19 = vector.broadcast %18 : vector<2x1xf32> to vector<2x8xf32>
    %20 = arith.mulf %19, %0 : vector<2x8xf32>
    %21 = vector.extract_strided_slice %17 {offsets = [0, 1], sizes = [2, 1], strides = [1, 1]} : vector<2x8xf32> to vector<2x1xf32>
    %22 = vector.broadcast %21 : vector<2x1xf32> to vector<2x8xf32>
    %23 = arith.mulf %22, %0 : vector<2x8xf32>
    %24 = vector.extract_strided_slice %17 {offsets = [0, 2], sizes = [2, 1], strides = [1, 1]} : vector<2x8xf32> to vector<2x1xf32>
    %25 = vector.broadcast %24 : vector<2x1xf32> to vector<2x8xf32>
    %26 = arith.mulf %25, %0 : vector<2x8xf32>
    %27 = vector.extract_strided_slice %17 {offsets = [0, 3], sizes = [2, 1], strides = [1, 1]} : vector<2x8xf32> to vector<2x1xf32>
    %28 = vector.broadcast %27 : vector<2x1xf32> to vector<2x8xf32>
    %29 = arith.mulf %28, %0 : vector<2x8xf32>
    %30 = vector.extract_strided_slice %17 {offsets = [0, 4], sizes = [2, 1], strides = [1, 1]} : vector<2x8xf32> to vector<2x1xf32>
    %31 = vector.broadcast %30 : vector<2x1xf32> to vector<2x8xf32>
    %32 = arith.mulf %31, %0 : vector<2x8xf32>
    %33 = vector.extract_strided_slice %17 {offsets = [0, 5], sizes = [2, 1], strides = [1, 1]} : vector<2x8xf32> to vector<2x1xf32>
    %34 = vector.broadcast %33 : vector<2x1xf32> to vector<2x8xf32>
    %35 = arith.mulf %34, %0 : vector<2x8xf32>
    %36 = vector.extract_strided_slice %17 {offsets = [0, 6], sizes = [2, 1], strides = [1, 1]} : vector<2x8xf32> to vector<2x1xf32>
    %37 = vector.broadcast %36 : vector<2x1xf32> to vector<2x8xf32>
    %38 = arith.mulf %37, %0 : vector<2x8xf32>
    %39 = vector.extract_strided_slice %17 {offsets = [0, 7], sizes = [2, 1], strides = [1, 1]} : vector<2x8xf32> to vector<2x1xf32>
    %40 = vector.broadcast %39 : vector<2x1xf32> to vector<2x8xf32>
    %41 = arith.mulf %40, %0 : vector<2x8xf32>
    %42 = tpu.concatenate %20, %23, %26, %29, %32, %35, %38, %41 in 1 : vector<2x8xf32>, vector<2x8xf32>, vector<2x8xf32>, vector<2x8xf32>, vector<2x8xf32>, vector<2x8xf32>, vector<2x8xf32>, vector<2x8xf32> -> vector<2x64xf32>
    %43 = tpu.iota {dimensions = array<i32: 1>} : vector<1x64xi32>
    %c9_i32 = arith.constant 9 : i32
    %c0_i32 = arith.constant 0 : i32
    %44 = arith.cmpi eq, %c9_i32, %c0_i32 : i32
    %c1_i32 = arith.constant 1 : i32
    %45 = arith.select %44, %c1_i32, %c9_i32 : i32
    %46 = vector.broadcast %45 : i32 to vector<1x64xi32>
    %47 = arith.remsi %43, %46 : vector<1x64xi32>
    %c0_i32_7 = arith.constant 0 : i32
    %48 = vector.broadcast %c0_i32_7 : i32 to vector<1x64xi32>
    %49 = arith.cmpi ne, %47, %48 : vector<1x64xi32>
    %c0_i32_8 = arith.constant 0 : i32
    %50 = vector.broadcast %c0_i32_8 : i32 to vector<1x64xi32>
    %51 = arith.cmpi slt, %47, %50 : vector<1x64xi32>
    %c0_i32_9 = arith.constant 0 : i32
    %52 = arith.cmpi slt, %45, %c0_i32_9 : i32
    %53 = vector.broadcast %52 : i1 to vector<1x64xi1>
    %54 = vector.broadcast %53 : vector<1x64xi1> to vector<1x64xi1>
    %55 = arith.xori %51, %54 : vector<1x64xi1>
    %56 = arith.andi %55, %49 : vector<1x64xi1>
    %57 = vector.broadcast %45 : i32 to vector<1x64xi32>
    %58 = arith.addi %47, %57 : vector<1x64xi32>
    %59 = arith.select %56, %58, %47 : vector<1x64xi1>, vector<1x64xi32>
    %c0_i32_10 = arith.constant 0 : i32
    %60 = vector.broadcast %c0_i32_10 : i32 to vector<1x64xi32>
    %61 = arith.cmpi eq, %59, %60 : vector<1x64xi32>
    %62 = arith.extui %61 : vector<1x64xi1> to vector<1x64xi32>
    %63 = arith.sitofp %62 : vector<1x64xi32> to vector<1x64xf32>
    %64 = vector.broadcast %63 : vector<1x64xf32> to vector<2x64xf32>
    %65 = arith.addf %42, %64 : vector<2x64xf32>
    %c0_11 = arith.constant 0 : index
    %c0_12 = arith.constant 0 : index
    %66 = vector.load %arg3[%c0_11, %c0_12] : memref<2x64xf32, #tpu.memory_space<vmem>>, vector<2x64xf32>
    tpu.vector_store %arg3[%c0_11, %c0_12], %65 {strides = array<i32>} : memref<2x64xf32, #tpu.memory_space<vmem>>, vector<2x64xf32>,
    return
  }
  func.func @transform_0(%arg0: i32) -> (i32, i32) {
    %c0_i32 = arith.constant 0 : i32
    %c0_i32_0 = arith.constant 0 : i32
    return %arg0, %c0_i32 : i32, i32
  }
  func.func @transform_1(%arg0: i32) -> (i32, i32) {
    %c0_i32 = arith.constant 0 : i32
    %c0_i32_0 = arith.constant 0 : i32
    return %arg0, %c0_i32 : i32, i32
  }
  func.func @transform_2(%arg0: i32) -> (i32, i32) {
    %c0_i32 = arith.constant 0 : i32
    %c0_i32_0 = arith.constant 0 : i32
    return %arg0, %c0_i32 : i32, i32
  }
  func.func @transform_3(%arg0: i32) -> (i32, i32) {
    %c0_i32 = arith.constant 0 : i32
    %c0_i32_0 = arith.constant 0 : i32
    return %arg0, %c0_i32 : i32, i32
  }
}

</mosaic_0001>

<bundles_post_ra>
// kernel: tpu_custom_call.1
= control target key start
LH: loop header
LB: loop body
LE: loop exit
PB: predicated region body
PF: predicated region fallthrough
CT: control target
= control target key end

     0   :  { %9 = vsyncpa [#allocation3], 0  ;;  %s386_s0 = inlined_call_operand.hbm [shape: f32[2,8], index: 0, kind: input, shape index: {}]   ;;  %s387_s1 = inlined_call_operand.vmem [shape: f32[2,8], index: 1, kind: input, shape index: {}]   ;;  %s388_s2 = inlined_call_operand.hbm [shape: f32[2,64], index: 2, kind: output, shape index: {0}]   ;;  %s389_s3 = inlined_call_operand.hbm [shape: f32[2,8], index: 3, kind: output, shape index: {1}]  }
   0x1   :  { %10 = vsyncpa [#allocation4], 0 }
   0x2   :  { %11 = vsyncpa [#allocation7], 0  ;;  %s286_s12 = smov [#allocation2]   ;;  %s214_s16 = scalar_lea.hbm %s386_s0, 32 }
   0x3   :  { %s18_s13 = sshll.u32 %s286_s12, 4  ;;  %p215_p0 = scmp.ne.s32.totalorder %s386_s0, %s214_s16  ;;  %s19_s13 = int_to_ptr.vmem [resolvable:$true] %s18_s13 }
   0x4   :  { %p218_p1 = scmp.lt.u32.totalorder %s214_s16, %s386_s0 }
   0x6   :  { %p220_p2 = pnand %p218_p1, %p215_p0 }
   0x8   :  { %223 = shalt.err (!%p220_p2)
}
   0x9   :  { %s224_s21 = scalar_lea.vmem %s19_s13, 32  ;;  %p229_p4 = scmp.lt.s32.totalorder %s19_s13, %s19_s13 }
   0xa   :  { %p225_p3 = scmp.ne.s32.totalorder %s19_s13, %s224_s21  ;;  %p230_p5 = scmp.lt.s32.totalorder %s224_s21, %s224_s21 }
   0xc   :  { %p231_p6 = por %p230_p5, %p229_p4 }
   0xe   :  { %p232_p7 = pnand %p231_p6, %p225_p3 }
  0x10   :  { %235 = shalt.err (!%p232_p7)
}
  0x11   :  { %21 = dma.hbm_to_vmem [thread:$0]  %s386_s0, 32, %s19_s13, [#allocation3]  }
  0x12   :  { %280 = dma.done.wait [#allocation3], 32  }
  0x13   :  { %281 = vsyncadd [#allocation3], 4294967264  ;;  %v337_v0 = vld [vmem:[#allocation2] sm:$0x3]  ;;  %vm30_vm0 = vcmask 58368   ;;  %v287_v3 = vmov 2  }
  0x14   :  { %v29_v1 = vmul.f32 %v337_v0, %v337_v0  ;;  %204 = vset.pattern.permute.xlu1 %v287_v3  ;;  %v288_v4 = vmov 1   ;;  %v289_v9 = vmov 3   ;;  %v290_v10 = vmov 0   ;;  %v28_v15 = vld [vmem:[%s387_s1] sm:$0x3]  ;;  %s295_s25 = smov 8  }
  0x15   :  { %203 = vset.pattern.permute.xlu0 %v288_v4  ;;  %v291_v11 = vmov 4   ;;  %v292_v12 = vmov 7   ;;  %v293_v13 = vmov 5   ;;  %v294_v14 = vmov 6   ;;  %s296_s26 = smov 16   ;;  %s297_s27 = smov 24  }
  0x16   :  { %v31_v2 = vsel %vm30_vm0, %v29_v1, 0.0  ;;  %v36_v16 = vmul.f32 %v28_v15, %v337_v0  ;;  %s298_s1 = smov 32   ;;  %s299_s28 = smov 40  }
  0x17   :  { %32 = vadd.xlane.f32.xlu0 %v31_v2  ;;  %s300_s29 = smov 48   ;;  %s301_s30 = smov 56  }
  0x18   :  { %v37_v17 = vsel %vm30_vm0, %v36_v16, 0.0  ;;  %s302_s4 = smov [#allocation6]  }
  0x19   :  { %s168_s5 = sshll.u32 %s302_s4, 4  ;;  %s169_s5 = int_to_ptr.vmem [resolvable:$true] %s168_s5 }
  0x1a   :  { %s236_s6 = scalar_lea.vmem %s169_s5, 32  ;;  %p241_p9 = scmp.lt.s32.totalorder %s169_s5, %s169_s5 }
  0x1b   :  { %p237_p8 = scmp.ne.s32.totalorder %s169_s5, %s236_s6  ;;  %p242_p10 = scmp.lt.s32.totalorder %s236_s6, %s236_s6 }
  0x1d   :  { %p243_p11 = por %p242_p10, %p241_p9 }
  0x1f   :  { %p244_p12 = pnand %p243_p11, %p237_p8 }
  0xa4   :  { %v33_v5 = vpop.xlane.xlu0 %32 }
  0xa5   :  { %212 = vrcp.f32 %v33_v5 }
  0xaf   :  { %v213_v6 = vpop.eup %212 }
  0xb0   :  { %v35_v7 = vmul.f32 -2.0, %v213_v6 }
  0xb2   :  { %v44_v8 = vmul.f32 %v35_v7, %v337_v0 }
  0xb4   :  { %57 = vperm.xlu1 %204, %v44_v8   ;;  %52 = vperm.xlu0 %203, %v44_v8  }
  0xb8   :  { %205 = vset.pattern.permute.xlu1 %v289_v9  ;;  %210 = vset.pattern.permute.xlu0 %v290_v10 }
  0xb9   :  { %62 = vperm.xlu1 %205, %v44_v8   ;;  %47 = vperm.xlu0 %210, %v44_v8  }
  0xbd   :  { %206 = vset.pattern.permute.xlu1 %v291_v11  ;;  %211 = vset.pattern.permute.xlu0 %v292_v12 }
  0xbe   :  { %67 = vperm.xlu1 %206, %v44_v8  }
  0xc2   :  { %207 = vset.pattern.permute.xlu1 %v293_v13 }
  0xc3   :  { %72 = vperm.xlu1 %207, %v44_v8  }
  0xc7   :  { %208 = vset.pattern.permute.xlu1 %v294_v14 }
  0xc8   :  { %77 = vperm.xlu1 %208, %v44_v8  }
  0xcc   :  { %209 = vset.pattern.permute.xlu1 %v292_v12 }
  0xcd   :  { %82 = vperm.xlu1 %209, %v44_v8  }
  0xf1   :  { %38 = vadd.xlane.f32.xlu1 %v37_v17 }
 0x133   :  { %v58_v18 = vpop.permute.xlu1 %57  ;;  %v53_v19 = vpop.permute.xlu0 %52 }
 0x134   :  { %v55_v20 = vmul.f32 %v53_v19, %v337_v0  ;;  %v60_v21 = vmul.f32 %v58_v18, %v337_v0 }
 0x136   :  { %87 = vrot.lane.b32.xlu0 %v55_v20, %s295_s25 }
 0x138   :  { %v63_v22 = vpop.permute.xlu1 %62 }
 0x139   :  { %v65_v23 = vmul.f32 %v63_v22, %v337_v0 }
 0x13a   :  { %91 = vrot.lane.b32.xlu0 %v60_v21, %s296_s26 }
 0x13b   :  { %95 = vrot.lane.b32.xlu1 %v65_v23, %s297_s27 }
 0x13d   :  { %v68_v24 = vpop.permute.xlu1 %67 }
 0x13e   :  { %v70_v25 = vmul.f32 %v68_v24, %v337_v0 }
 0x140   :  { %99 = vrot.lane.b32.xlu0 %v70_v25, %s298_s1 }
 0x142   :  { %v73_v26 = vpop.permute.xlu1 %72 }
 0x143   :  { %v75_v27 = vmul.f32 %v73_v26, %v337_v0 }
 0x145   :  { %103 = vrot.lane.b32.xlu0 %v75_v27, %s299_s28 }
 0x147   :  { %v78_v28 = vpop.permute.xlu1 %77 }
 0x148   :  { %v80_v29 = vmul.f32 %v78_v28, %v337_v0 }
 0x14a   :  { %107 = vrot.lane.b32.xlu0 %v80_v29, %s300_s29 }
 0x14c   :  { %v83_v30 = vpop.permute.xlu1 %82 }
 0x14d   :  { %v85_v31 = vmul.f32 %v83_v30, %v337_v0 }
 0x14f   :  { %111 = vrot.lane.b32.xlu0 %v85_v31, %s301_s30 }
 0x17e   :  { %v39_v32 = vpop.xlane.xlu1 %38 }
 0x17f   :  { %v40_v33 = vmul.f32 %v39_v32, %v35_v7 }
 0x181   :  { %v41_v34 = vmul.f32 %v40_v33, %v337_v0 }
 0x183   :  { %v42_v35 = vadd.f32 %v41_v34, %v28_v15 }
 0x185   :  { %43 = vst.msk [vmem:[#allocation6] sm:$0x3] %vm30_vm0, %v42_v35 }
 0x186   :  { %247 = shalt.err (!%p244_p12)
}
 0x187   :  { %s248_s9 = scalar_lea.hbm %s389_s3, 32 }
 0x188   :  { %p249_p13 = scmp.ne.s32.totalorder %s389_s3, %s248_s9  ;;  %p252_p0 = scmp.lt.u32.totalorder %s248_s9, %s389_s3 }
 0x18a   :  { %p254_p1 = pnand %p252_p0, %p249_p13 }
 0x18c   :  { %257 = shalt.err (!%p254_p1)
}
 0x18d   :  { %171 = dma.vmem_to_hbm [thread:$0]  %s169_s5, 32, %s389_s3, [#allocation7]   ;;  %v128_v36 = vlaneseq  ;;  %v48_v40 = vpop.permute.xlu0 %47  ;;  %vm114_vm3 = vcmask 64512   ;;  %vm116_vm5 = vcmask 130048   ;;  %vm118_vm6 = vcmask 195584  }
 0x18e   :  { %v50_v49 = vmul.f32 %v48_v40, %v337_v0  ;;  %vm120_vm7 = vcmask 261120   ;;  %vm122_vm8 = vcmask 326656   ;;  %vm124_vm10 = vcmask 392192   ;;  %s304_s3 = smov [#allocation5]  }
 0x18f   :  { %v129_v37 = vand.u32 127, %v128_v36  ;;  %vm126_vm11 = vcmask 457728   ;;  %v303_v58 = vmov 0.0   ;;  %s158_s16 = sshll.u32 %s304_s3, 4  ;;  %vm150_vm12 = vcmask 517120   ;;  %s159_s16 = int_to_ptr.vmem [resolvable:$true] %s158_s16 }
 0x190   :  { %s258_s17 = scalar_lea.vmem %s159_s16, 32  ;;  %p263_p3 = scmp.lt.s32.totalorder %s159_s16, %s159_s16 }
 0x191   :  { %v369_v38 = vmul.u32.u64.low 3817748708, %v129_v37  ;;  %v370_v39 = vmul.u32.u64.high 3817748708, %v129_v37, %v369_v38  ;;  %p259_p2 = scmp.ne.s32.totalorder %s159_s16, %s258_s17  ;;  %p264_p4 = scmp.lt.s32.totalorder %s258_s17, %s258_s17 }
 0x193   :  { %v136_v42 = vshrl.u32 %v370_v39, 3  ;;  %p265_p5 = por %p264_p4, %p263_p3 }
 0x195   :  { %v137_v43 = vmul.u32 9, %v136_v42  ;;  %p266_p6 = pnand %p265_p5, %p259_p2 }
 0x197   :  { %v138_v45 = vsub.s32 %v129_v37, %v137_v43 }
 0x199   :  { %vm141_vm1 = vcmp.ne.s32.totalorder %v138_v45, 0  ;;  %vm142_vm2 = vcmp.lt.s32.totalorder %v138_v45, 0  ;;  %v144_v47 = vadd.s32 9, %v138_v45 }
 0x19a   :  { %vm143_vm4 = vmand %vm142_vm2, %vm141_vm1 }
 0x19b   :  { %v145_v51 = vsel %vm143_vm4, %v144_v47, %v138_v45 }
 0x19c   :  { %vm146_vm9 = vcmp.eq.s32.totalorder %v145_v51, 0 }
 0x19d   :  { %v181_v59 = vsel %vm146_vm9, 1.0, %v303_v58 }
 0x1a8   :  { %v88_v41 = vpop.permute.xlu0 %87 }
 0x1a9   :  { %v115_v50 = vsel %vm114_vm3, %v50_v49, %v88_v41 }
 0x1ac   :  { %v92_v44 = vpop.permute.xlu0 %91 }
 0x1ad   :  { %v117_v52 = vsel %vm116_vm5, %v115_v50, %v92_v44  ;;  %v96_v53 = vpop.permute.xlu1 %95 }
 0x1ae   :  { %v119_v55 = vsel %vm118_vm6, %v117_v52, %v96_v53 }
 0x1b2   :  { %v100_v46 = vpop.permute.xlu0 %99 }
 0x1b3   :  { %v121_v56 = vsel %vm120_vm7, %v119_v55, %v100_v46 }
 0x1b7   :  { %v104_v48 = vpop.permute.xlu0 %103 }
 0x1b8   :  { %v123_v57 = vsel %vm122_vm8, %v121_v56, %v104_v48 }
 0x1bc   :  { %v108_v54 = vpop.permute.xlu0 %107 }
 0x1bd   :  { %v125_v60 = vsel %vm124_vm10, %v123_v57, %v108_v54 }
 0x1c1   :  { %v112_v61 = vpop.permute.xlu0 %111 }
 0x1c2   :  { %v127_v62 = vsel %vm126_vm11, %v125_v60, %v112_v61 }
 0x1c3   :  { %v149_v63 = vadd.f32 %v181_v59, %v127_v62 }
 0x1c5   :  { %151 = vst.msk [vmem:[#allocation5] sm:$0x3] %vm150_vm12, %v149_v63 }
 0x1c6   :  { %269 = shalt.err (!%p266_p6)
}
 0x1c7   :  { %s270_s20 = scalar_lea.hbm %s388_s2, 32 }
 0x1c8   :  { %p271_p7 = scmp.ne.s32.totalorder %s388_s2, %s270_s20  ;;  %p274_p8 = scmp.lt.u32.totalorder %s270_s20, %s388_s2 }
 0x1ca   :  { %p276_p9 = pnand %p274_p8, %p271_p7 }
 0x1cc   :  { %279 = shalt.err (!%p276_p9)
}
 0x1cd   :  { %161 = dma.vmem_to_hbm [thread:$0]  %s159_s16, 32, %s388_s2, [#allocation4]  }
 0x1ce   :  { %282 = dma.done.wait [#allocation4], 32  }
 0x1cf   :  { %283 = vsyncadd [#allocation4], 4294967264 }
 0x1d0   :  { %284 = dma.done.wait [#allocation7], 32  }
 0x1d1   :  { %285 = vsyncadd [#allocation7], 4294967264 }
 0x1d2   :  { %178 = vsyncpa [#allocation3], 1 }
 0x1d3   :  { %179 = vsyncpa [#allocation4], 1 }
 0x1d4   :  { %180 = vsyncpa [#allocation7], 1 }

</bundles_post_ra>
